<compile_context>
chip_gen: v7x
topology: tpu7x:2x2x1
jax: 0.10.0
libtpu: 0.0.40
codegen_flags: <defaults>
</compile_context>

<pallas_src>
import functools

import jax
import jax.numpy as jnp
import numpy as np
from jax.experimental import pallas as pl
from jax.experimental.pallas import tpu as pltpu


# log(smallest positive normal f32): below this the normalized tail probability
# flushes to 0 in f32, which is the condition the reference tests
# (prob[:, nc:].sum(1) == 0) for the 1e-6 soft-weight path.
_LOG_F32_TINY = float(np.log(np.finfo(np.float32).tiny))
_LOG_SOFT_EPS = float(np.log(1e-6))


def _target_discrim_loss_kernel(x_ref, o_ref, *, num_classes, batch):
    tb, c = x_ref.shape
    x = x_ref[...].astype(jnp.float32)                          # (TB, C)

    # Numerically-stable softmax pieces; `prob` is never materialized.
    m = jnp.max(x, axis=1, keepdims=True)                       # (TB, 1)  XLU
    e = jnp.exp(x - m)                                          # (TB, C)  EUP
    denom = jnp.sum(e, axis=1, keepdims=True)                   # (TB, 1)  XLU

    # Tail ("target") column mask built at (1, C): one vreg of iota/cmp/cast per
    # grid step (the body re-runs every step) and broadcast into the multiply.
    col = jax.lax.broadcasted_iota(jnp.int32, (1, c), 1)
    tail_mask = (col >= num_classes).astype(jnp.float32)        # (1, C)
    tail_numer = jnp.sum(e * tail_mask, axis=1, keepdims=True)  # (TB, 1)  XLU

    # Single narrow EUP log pass: lane-pack [tail_numer, denom] into (TB, 2)
    # via broadcast+select, log once, then take log(tail)-log(denom) with a
    # signed lane reduction (all standard ops, no concat / offset slices).
    lane2 = jax.lax.broadcasted_iota(jnp.int32, (1, 2), 1)      # (1, 2)
    packed = jnp.where(lane2 == 0, tail_numer, denom)           # (TB, 2)
    sign = jnp.where(lane2 == 0, jnp.float32(1.0), jnp.float32(-1.0))
    log_tail = jnp.sum(jnp.log(packed) * sign, axis=1, keepdims=True)  # (TB, 1)

    # soft_weight path: the reference substitutes 1e-6 where the *normalized*
    # tail probability is exactly 0.  In f32 (flush-to-zero) that happens iff
    # tail_numer/denom < FLT_MIN, i.e. log_tail < log(FLT_MIN); this also
    # covers tail_numer == 0 (log_tail == -inf).
    log_tail = jnp.where(log_tail < _LOG_F32_TINY,
                         jnp.float32(_LOG_SOFT_EPS), log_tail)

    rem = batch % tb  # Python int: valid rows in the (only possibly) partial last tile
    if rem == 0:
        # Every tile is exactly full: no padded-row masking anywhere.
        o_ref[...] = jnp.broadcast_to(jnp.sum(log_tail), o_ref.shape)
    else:
        last = pl.num_programs(0) - 1

        @pl.when(pl.program_id(0) != last)
        def _():
            o_ref[...] = jnp.broadcast_to(jnp.sum(log_tail), o_ref.shape)

        @pl.when(pl.program_id(0) == last)
        def _():
            # Only the final partial tile pays for the row mask.  Padded rows
            # hold uninitialized VMEM, so their log_tail may be NaN/Inf; a
            # select (never a multiply) discards them before the reduction.
            row = jax.lax.broadcasted_iota(jnp.int32, (tb, 1), 0)
            masked = jnp.where(row < rem, log_tail, jnp.float32(0.0))
            o_ref[...] = jnp.broadcast_to(jnp.sum(masked), o_ref.shape)


def _choose_tiling(batch, max_rows_per_tile):
    """Pick a batch-tile size (multiple of 8) and a balanced tile count.

    Big tiles amortize the ~0.35us per-grid-step overhead; a balanced, even
    number of tiles (when there is enough work) lets v7x shard the "parallel"
    grid axis evenly across its two TensorCores (no effect on v5e/v6e).
    """
    cap = max(8, (max_rows_per_tile // 8) * 8)
    num_tiles = pl.cdiv(batch, cap)
    if num_tiles == 1 and batch >= 2048:
        num_tiles = 2                      # give both v7x cores a full-size tile
    elif num_tiles > 1 and num_tiles % 2 == 1:
        num_tiles += 1                     # even, balanced tile count
    tb = max(8, ((pl.cdiv(batch, num_tiles) + 7) // 8) * 8)
    return tb, pl.cdiv(batch, tb)


def target_discrim_loss(logits, num_classes=31, *, max_rows_per_tile=8192):
    """TargetDiscrimLoss.forward.

    logits: (B, C) float array (f32 or bf16) with C >= num_classes.
    Returns scalar f32: -mean(log(softmax(logits)[:, num_classes:].sum(1))).
    """
    B, C = logits.shape
    TB, num_tiles = _choose_tiling(B, max_rows_per_tile)

    kernel = functools.partial(
        _target_discrim_loss_kernel, num_classes=num_classes, batch=B)

    partials = pl.pallas_call(
        kernel,
        out_shape=jax.ShapeDtypeStruct((num_tiles, 1, 128), jnp.float32),
        grid_spec=pl.GridSpec(
            grid=(num_tiles,),
            in_specs=[pl.BlockSpec((TB, C), lambda i: (i, 0))],
            out_specs=pl.BlockSpec((1, 1, 128), lambda i: (i, 0, 0)),
        ),
        compiler_params=pltpu.CompilerParams(
            dimension_semantics=("parallel",)),
    )(logits)

    # Tiny finalize in plain JAX: mean over the true batch size.
    return -(jnp.sum(partials[:, 0, 0]) / jnp.float32(B))


def _reference(logits, num_classes):
    # pure-JAX reference for a sanity check
    prob = jax.nn.softmax(logits.astype(jnp.float32), axis=1)
    tail_sum = prob[:, num_classes:].sum(axis=1)
    soft = jnp.where(tail_sum == 0.0, 1e-6, 0.0)
    return -jnp.mean(jnp.log(tail_sum + soft))


if __name__ == "__main__":
    key = jax.random.PRNGKey(0)
    num_classes = 31
    total_classes = 2 * num_classes   # source + target logits -> C = 62

    # Small case (single tile).
    batch = 8
    logits = jax.random.normal(key, (batch, total_classes), dtype=jnp.float32)
    loss = jax.block_until_ready(target_discrim_loss(logits, num_classes))
    ref = jax.block_until_ready(_reference(logits, num_classes))
    assert jnp.allclose(loss, ref, rtol=1e-5, atol=1e-5), (loss, ref)

    # Multi-tile case with a partial last tile: forces a small tile cap so the
    # balanced/even tiling, the pl.when last-tile row mask, and the cross-tile
    # partial-sum reduction are all exercised at a small shape.
    batch2 = 1037
    logits2 = jax.random.normal(
        jax.random.PRNGKey(1), (batch2, total_classes), dtype=jnp.float32)
    loss2 = jax.block_until_ready(
        target_discrim_loss(logits2, num_classes, max_rows_per_tile=256))
    ref2 = jax.block_until_ready(_reference(logits2, num_classes))
    assert jnp.allclose(loss2, ref2, rtol=1e-5, atol=1e-5), (loss2, ref2)

    # Same batch with the default (large) tile cap: single partial tile path.
    loss3 = jax.block_until_ready(target_discrim_loss(logits2, num_classes))
    assert jnp.allclose(loss3, ref2, rtol=1e-5, atol=1e-5), (loss3, ref2)

    print("KERNEL_OK")
</pallas_src>

<mosaic_0001>
module attributes {stable_mosaic.version = 11 : i64} {
  func.func @_target_discrim_loss_kernel(%arg0: i32, %arg1: memref<8x62xf32, #tpu.memory_space<vmem>>, %arg2: memref<1x1x128xf32, #tpu.memory_space<vmem>>) attributes {dimension_semantics = [#tpu.dimension_semantics<parallel>], iteration_bounds = array<i64: 1>, scalar_prefetch = 0 : i64, scratch_operands = 0 : i64, tpu.core_type = #tpu.core_type<tc>, window_params = [{transform_indices = @transform_0, window_bounds = array<i64: 8, 62>}, {transform_indices = @transform_1, window_bounds = array<i64: 1, 1, 128>}]} {
    %c0 = arith.constant 0 : index
    %c0_0 = arith.constant 0 : index
    %0 = vector.load %arg1[%c0, %c0_0] : memref<8x62xf32, #tpu.memory_space<vmem>>, vector<8x62xf32>
    %cst = arith.constant dense<0xFF800000> : vector<8xf32>
    %1 = vector.multi_reduction <maximumf>, %0, %cst [1] : vector<8x62xf32> to vector<8xf32>
    %2 = vector.shape_cast %1 : vector<8xf32> to vector<8x1xf32>
    %3 = vector.broadcast %2 : vector<8x1xf32> to vector<8x62xf32>
    %4 = arith.subf %0, %3 : vector<8x62xf32>
    %5 = math.exp %4 : vector<8x62xf32>
    %cst_1 = arith.constant dense<0.000000e+00> : vector<8xf32>
    %6 = vector.multi_reduction <add>, %5, %cst_1 [1] : vector<8x62xf32> to vector<8xf32>
    %7 = vector.shape_cast %6 : vector<8xf32> to vector<8x1xf32>
    %8 = tpu.iota {dimensions = array<i32: 1>} : vector<1x62xi32>
    %c31_i32 = arith.constant 31 : i32
    %9 = vector.broadcast %c31_i32 : i32 to vector<1x62xi32>
    %10 = arith.cmpi sge, %8, %9 : vector<1x62xi32>
    %11 = arith.extui %10 : vector<1x62xi1> to vector<1x62xi32>
    %12 = arith.sitofp %11 : vector<1x62xi32> to vector<1x62xf32>
    %13 = vector.broadcast %12 : vector<1x62xf32> to vector<8x62xf32>
    %14 = arith.mulf %5, %13 : vector<8x62xf32>
    %cst_2 = arith.constant dense<0.000000e+00> : vector<8xf32>
    %15 = vector.multi_reduction <add>, %14, %cst_2 [1] : vector<8x62xf32> to vector<8xf32>
    %16 = vector.shape_cast %15 : vector<8xf32> to vector<8x1xf32>
    %17 = tpu.iota {dimensions = array<i32: 1>} : vector<1x2xi32>
    %c0_i32 = arith.constant 0 : i32
    %18 = vector.broadcast %c0_i32 : i32 to vector<1x2xi32>
    %19 = arith.cmpi eq, %17, %18 : vector<1x2xi32>
    %20 = vector.shape_cast %19 : vector<1x2xi1> to vector<1x2xi1>
    %21 = vector.broadcast %20 : vector<1x2xi1> to vector<8x2xi1>
    %22 = vector.shape_cast %16 : vector<8x1xf32> to vector<8x1xf32>
    %23 = vector.broadcast %22 : vector<8x1xf32> to vector<8x2xf32>
    %24 = vector.shape_cast %7 : vector<8x1xf32> to vector<8x1xf32>
    %25 = vector.broadcast %24 : vector<8x1xf32> to vector<8x2xf32>
    %26 = arith.select %21, %23, %25 : vector<8x2xi1>, vector<8x2xf32>
    %c0_i32_3 = arith.constant 0 : i32
    %27 = vector.broadcast %c0_i32_3 : i32 to vector<1x2xi32>
    %28 = arith.cmpi eq, %17, %27 : vector<1x2xi32>
    %cst_4 = arith.constant 1.000000e+00 : f32
    %cst_5 = arith.constant -1.000000e+00 : f32
    %29 = vector.broadcast %cst_4 : f32 to vector<1x2xf32>
    %30 = vector.broadcast %cst_5 : f32 to vector<1x2xf32>
    %31 = arith.select %28, %29, %30 : vector<1x2xi1>, vector<1x2xf32>
    %32 = math.log %26 : vector<8x2xf32>
    %33 = vector.broadcast %31 : vector<1x2xf32> to vector<8x2xf32>
    %34 = arith.mulf %32, %33 : vector<8x2xf32>
    %cst_6 = arith.constant dense<0.000000e+00> : vector<8xf32>
    %35 = vector.multi_reduction <add>, %34, %cst_6 [1] : vector<8x2xf32> to vector<8xf32>
    %36 = vector.shape_cast %35 : vector<8xf32> to vector<8x1xf32>
    %cst_7 = arith.constant -87.3365478 : f32
    %37 = vector.broadcast %cst_7 : f32 to vector<8x1xf32>
    %38 = arith.cmpf olt, %36, %37 : vector<8x1xf32>
    %cst_8 = arith.constant -13.8155107 : f32
    %39 = vector.broadcast %cst_8 : f32 to vector<8x1xf32>
    %40 = arith.select %38, %39, %36 : vector<8x1xi1>, vector<8x1xf32>
    %41 = vector.shape_cast %40 : vector<8x1xf32> to vector<1x8x1xf32>
    %cst_9 = arith.constant dense<0.000000e+00> : vector<1xf32>
    %42 = vector.multi_reduction <add>, %41, %cst_9 [1, 2] : vector<1x8x1xf32> to vector<1xf32>
    %43 = vector.shape_cast %42 : vector<1xf32> to vector<1x1x1xf32>
    %44 = vector.extract %43[0, 0, 0] : f32 from vector<1x1x1xf32>
    %45 = vector.broadcast %44 : f32 to vector<1x1x128xf32>
    %c0_10 = arith.constant 0 : index
    %c0_11 = arith.constant 0 : index
    %c0_12 = arith.constant 0 : index
    %46 = vector.load %arg2[%c0_10, %c0_11, %c0_12] : memref<1x1x128xf32, #tpu.memory_space<vmem>>, vector<1x1x128xf32>
    tpu.vector_store %arg2[%c0_10, %c0_11, %c0_12], %45 {strides = array<i32>} : memref<1x1x128xf32, #tpu.memory_space<vmem>>, vector<1x1x128xf32>,
    return
  }
  func.func @transform_0(%arg0: i32) -> (i32, i32) {
    %c0_i32 = arith.constant 0 : i32
    %c0_i32_0 = arith.constant 0 : i32
    return %arg0, %c0_i32 : i32, i32
  }
  func.func @transform_1(%arg0: i32) -> (i32, i32, i32) {
    %c0_i32 = arith.constant 0 : i32
    %c0_i32_0 = arith.constant 0 : i32
    %c0_i32_1 = arith.constant 0 : i32
    return %arg0, %c0_i32, %c0_i32_0 : i32, i32, i32
  }
}

</mosaic_0001>

<bundles_post_ra>
// kernel: tpu_custom_call.1
= control target key start
LH: loop header
LB: loop body
LE: loop exit
PB: predicated region body
PF: predicated region fallthrough
CT: control target
= control target key end

     0   :  { %6 = vsyncpa [#allocation3], 0  ;;  %s183_s0 = inlined_call_operand.hbm [shape: f32[8,62], index: 0, kind: input, shape index: {}]   ;;  %s184_s1 = inlined_call_operand.hbm [shape: f32[1,1,128], index: 1, kind: output, shape index: {}]  }
   0x1   :  { %7 = vsyncpa [#allocation4], 0  ;;  %s142_s6 = smov [#allocation2]   ;;  %s94_s10 = scalar_lea.hbm %s183_s0, 128 }
   0x2   :  { %s14_s7 = sshll.u32 %s142_s6, 4  ;;  %p95_p0 = scmp.ne.s32.totalorder %s183_s0, %s94_s10  ;;  %s15_s7 = int_to_ptr.vmem [resolvable:$true] %s14_s7 }
   0x3   :  { %p98_p1 = scmp.lt.u32.totalorder %s94_s10, %s183_s0 }
   0x5   :  { %p100_p2 = pnand %p98_p1, %p95_p0 }
   0x7   :  { %103 = shalt.err (!%p100_p2)
}
   0x8   :  { %s104_s15 = scalar_lea.vmem %s15_s7, 128  ;;  %p109_p4 = scmp.lt.s32.totalorder %s15_s7, %s15_s7 }
   0x9   :  { %p105_p3 = scmp.ne.s32.totalorder %s15_s7, %s104_s15  ;;  %p110_p5 = scmp.lt.s32.totalorder %s104_s15, %s104_s15 }
   0xb   :  { %p111_p6 = por %p110_p5, %p109_p4 }
   0xd   :  { %p112_p7 = pnand %p111_p6, %p105_p3 }
   0xf   :  { %115 = shalt.err (!%p112_p7)
}
  0x10   :  { %17 = dma.hbm_to_vmem [thread:$0]  %s183_s0, 128, %s15_s7, [#allocation3]  }
  0x11   :  { %138 = dma.done.wait [#allocation3], 128  }
  0x12   :  { %139 = vsyncadd [#allocation3], 4294967168  ;;  %vm22_vm0 = vcmask 506880   ;;  %v21_v0 = vld [vmem:[#allocation2] sm:$0xff]  ;;  %v32_v4 = vlaneseq  ;;  %v143_v7 = vmov 0.0   ;;  %v144_v17 = vmov -1.0  }
  0x13   :  { %v23_v1 = vsel %vm22_vm0, %v21_v0, -inf  ;;  %vm49_vm3 = vcmask 15360   ;;  %vm55_vm4 = vcmask 7168   ;;  %s145_s0 = smov [#allocation5]  }
  0x14   :  { %24 = vmax.xlane.f32.xlu0 %v23_v1  ;;  %v33_v6 = vand.u32 127, %v32_v4  ;;  %s74_s18 = sshll.u32 %s145_s0, 4  ;;  %s75_s18 = int_to_ptr.vmem [resolvable:$true] %s74_s18 }
  0x15   :  { %s116_s20 = scalar_lea.vmem %s75_s18, 16  ;;  %s120_s21 = scalar_lea.vmem %s75_s18, 32 }
  0x16   :  { %vm34_vm1 = vcmp.ge.s32.totalorder %v33_v6, 31  ;;  %vm41_vm2 = vcmp.eq.s32.totalorder %v33_v6, 0  ;;  %p117_p8 = scmp.ne.s32.totalorder %s75_s18, %s116_s20  ;;  %p121_p9 = scmp.lt.s32.totalorder %s75_s18, %s75_s18 }
  0x17   :  { %v83_v8 = vsel %vm34_vm1, 1.0, %v143_v7  ;;  %v45_v18 = vsel %vm41_vm2, 1.0, %v144_v17  ;;  %p122_p10 = scmp.lt.s32.totalorder %s120_s21, %s116_s20 }
  0x19   :  { %p123_p11 = por %p122_p10, %p121_p9 }
  0x1b   :  { %p124_p12 = pnand %p123_p11, %p117_p8 }
  0xa1   :  { %v25_v2 = vpop.xlane.xlu0 %24 }
  0xa2   :  { %v26_v3 = vsub.f32 %v21_v0, %v25_v2 }
  0xa4   :  { %v27_v5 = vmul.f32 1.442695, %v26_v3 }
  0xa6   :  { %90 = vpow2.f32 %v27_v5 }
  0xb0   :  { %v91_v9 = vpop.eup %90 }
  0xb1   :  { %v29_v10 = vsel %vm22_vm0, %v91_v9, 0.0  ;;  %v37_v11 = vmul.f32 %v91_v9, %v83_v8 }
  0xb2   :  { %30 = vadd.xlane.f32.xlu0 %v29_v10 }
  0xb3   :  { %v38_v12 = vsel %vm22_vm0, %v37_v11, 0.0 }
  0xb4   :  { %39 = vadd.xlane.f32.xlu1 %v38_v12 }
 0x13f   :  { %v31_v13 = vpop.xlane.xlu0 %30 }
 0x141   :  { %v40_v14 = vpop.xlane.xlu1 %39 }
 0x142   :  { %v44_v15 = vsel %vm41_vm2, %v40_v14, %v31_v13 }
 0x143   :  { %92 = vlog2.f32 %v44_v15 }
 0x14d   :  { %v93_v16 = vpop.eup %92 }
 0x14e   :  { %v47_v19 = vmul.f32 0.6931472, %v93_v16 }
 0x150   :  { %v48_v20 = vmul.f32 %v47_v19, %v45_v18 }
 0x152   :  { %v50_v21 = vsel %vm49_vm3, %v48_v20, 0.0 }
 0x153   :  { %51 = vadd.xlane.f32.xlu1 %v50_v21 }
 0x1e0   :  { %v52_v22 = vpop.xlane.xlu1 %51 }
 0x1e1   :  { %vm53_vm5 = vcmp.lt.f32.partialorder %v52_v22, -87.33655 }
 0x1e2   :  { %v54_v23 = vsel %vm53_vm5, -13.815511, %v52_v22 }
 0x1e3   :  { %v56_v24 = vsel %vm55_vm4, %v54_v23, 0.0 }
 0x1e4   :  { %57 = vadd.xlane.f32.xlu0 %v56_v24 }
 0x271   :  { %v58_v25 = vpop.xlane.xlu0 %57 }
 0x272   :  { %v59_v26 = vrot.slane %v58_v25, 4 }
 0x274   :  { %v60_v27 = vadd.f32 %v59_v26, %v58_v25 }
 0x276   :  { %v61_v28 = vrot.slane %v60_v27, 2 }
 0x278   :  { %v62_v29 = vadd.f32 %v61_v28, %v60_v27 }
 0x27a   :  { %v63_v30 = vrot.slane %v62_v29, 1 }
 0x27c   :  { %v64_v31 = vadd.f32 %v63_v30, %v62_v29 }
 0x27e   :  { %84 = vpush %v64_v31 }
 0x2af   :  { %s85_s19 = spop %84 }
 0x2b0   :  { %v66_v32 = vstv %s85_s19 }
 0x2b1   :  { %67 = vst [vmem:[#allocation5] sm:$0x1] %v66_v32 }
 0x2b2   :  { %127 = shalt.err (!%p124_p12)
}
 0x2b3   :  { %s128_s24 = scalar_lea.hbm %s184_s1, 16 }
 0x2b4   :  { %p129_p13 = scmp.ne.s32.totalorder %s184_s1, %s128_s24  ;;  %p132_p0 = scmp.lt.u32.totalorder %s128_s24, %s184_s1 }
 0x2b6   :  { %p134_p1 = pnand %p132_p0, %p129_p13 }
 0x2b8   :  { %137 = shalt.err (!%p134_p1)
}
 0x2b9   :  { %77 = dma.vmem_to_hbm [thread:$0]  %s75_s18, 16, %s184_s1, [#allocation4]  }
 0x2ba   :  { %140 = dma.done.wait [#allocation4], 16  }
 0x2bb   :  { %141 = vsyncadd [#allocation4], 4294967280 }
 0x2bc   :  { %81 = vsyncpa [#allocation3], 1 }
 0x2bd   :  { %82 = vsyncpa [#allocation4], 1 }

</bundles_post_ra>
